<compile_context>
chip_gen: v6e
topology: v6e:2x2x1
jax: 0.10.0
libtpu: 0.0.40
codegen_flags: <defaults>
</compile_context>

<pallas_src>
import math
import functools

import jax
import jax.numpy as jnp
from jax.experimental import pallas as pl
from jax.experimental.pallas import tpu as pltpu


_LANE = 128  # TPU lane width; projection segments are padded to multiples of this.


def _round_up(x, m):
    return (x + m - 1) // m * m


def _self_attention_kernel(x_ref, w_qkv_ref, b_qkv_ref, o_ref, *, pq, pk, pv, dim_q):
    """One grid step processes a (block_b, S, D_in) slab of the batch.

    The fused projection weight is laid out as [Q | K | V] with each segment zero-padded to
    pq / pk / pv (multiples of 128 lanes), so the column slices below are 128-lane-aligned
    (free views), the store is lane dense, and the padded columns are exactly zero.
    """
    bt, s, d_in = x_ref.shape
    cdt = x_ref.dtype  # MXU compute dtype (bf16 stays bf16); accumulate in f32.

    # Fused Q/K/V projection: one (bt*S, D_in) @ (D_in, pq+pk+pv) matmul + one bias add.
    # (For a free-view reshape, S should be a multiple of 8 for f32 / 16 for bf16.)
    x2 = x_ref[...].reshape(bt * s, d_in)
    qkv = jnp.dot(x2, w_qkv_ref[...],
                  preferred_element_type=jnp.float32) + b_qkv_ref[...]   # (bt*s, pq+pk+pv) f32

    # 128-aligned column slices; cast back to the compute dtype for the MXU.
    q = qkv[:, :pq].reshape(bt, s, pq).astype(cdt)
    k = qkv[:, pq:pq + pk].reshape(bt, s, pk).astype(cdt)
    v = qkv[:, pq + pk:pq + pk + pv].reshape(bt, s, pv).astype(cdt)

    # Attention scores: contract the feature dim directly (no explicit K transpose).
    # Zero-padded feature columns contribute 0 to the contraction.
    scores = jnp.einsum("bqd,bkd->bqk", q, k,
                        preferred_element_type=jnp.float32)              # (bt, s, s) f32

    # Numerically-stable softmax in f32.  Fold the reference module's POST-softmax
    # 1/sqrt(dim_q) scale into the (bt, s, 1) reciprocal (one full-tile multiply total).
    scores_max = jnp.max(scores, axis=-1, keepdims=True)
    e = jnp.exp(scores - scores_max)
    denom = jnp.sum(e, axis=-1, keepdims=True)
    inv = pl.reciprocal(denom, approx=True) * (1.0 / math.sqrt(dim_q))   # EUP vrcp slot
    attn = (e * inv).astype(cdt)                                         # softmax / sqrt(dim_q)

    out = jnp.einsum("bqk,bkd->bqd", attn, v,
                     preferred_element_type=jnp.float32)                 # (bt, s, pv)
    o_ref[...] = out.astype(o_ref.dtype)                                 # lane-dense store


def _vmem_limit_bytes():
    """~75% of physical VMEM (capped at 100 MiB); safe on v7x (64 MiB) and roomy on v5e/v6e."""
    cap = None
    try:
        cap = getattr(pltpu.get_tpu_info(), "vmem_capacity_bytes", None)
    except Exception:
        cap = None
    if cap is None:
        cap = 64 * 1024 * 1024  # conservative fallback (v7x per-TensorCore VMEM)
    return min(int(cap * 0.75), 100 * 1024 * 1024)


def _pick_block_b(batch, seq, d_in, d_qkv_pad, pv, itemsize, vmem_limit_bytes):
    """Largest divisor of `batch` whose per-step working set fits a VMEM budget.

    Prefers leaving >= 2 grid steps so both v7x TensorCores get work on the parallel axis.
    (Per-step overhead is only ~0.35 us, so splitting the batch is cheap.)
    """
    budget = int(vmem_limit_bytes * 0.5)  # headroom for compiler scratch / pipeline buffers

    def step_bytes(bb):
        n = bb * seq
        b = 2 * n * d_in * itemsize          # x block (double-buffered)
        b += 2 * n * pv * itemsize           # output block (double-buffered)
        b += 2 * d_in * d_qkv_pad * itemsize # fused weight (double-buffered, resident)
        b += n * d_qkv_pad * 4               # qkv f32 accumulator
        b += n * d_qkv_pad * itemsize        # q/k/v compute-dtype copies
        b += 3 * bb * seq * seq * 4          # scores / e / attn
        return b

    divisors = [d for d in range(1, batch + 1) if batch % d == 0]
    fitting = [d for d in divisors if step_bytes(d) <= budget] or [1]
    best = max(fitting)
    if batch // best < 2:  # keep >= 2 grid steps when possible (v7x megacore)
        smaller = [d for d in fitting if batch // d >= 2]
        if smaller:
            best = max(smaller)
    return best


def self_attention(x, wq, bq, wk, bk, wv, bv, *, block_b=None):
    """x: (B, S, D_in); w*: (d_out, D_in); b*: (d_out,). Returns (B, S, dim_v)."""
    B, S, D_in = x.shape
    dim_q, dim_k, dim_v = wq.shape[0], wk.shape[0], wv.shape[0]

    # Lane-align each projection segment (zero padding; stripped from the output below).
    pq = _round_up(dim_q, _LANE)
    pk = _round_up(dim_k, _LANE)
    pv = _round_up(dim_v, _LANE)
    d_qkv_pad = pq + pk + pv

    cdt = x.dtype

    # Wrapper-side layout plumbing, done once (outside the grid loop):
    #  * pre-transpose each weight to (D_in, d_out) so the MXU sees (M,K)@(K,N) directly,
    #  * zero-pad each segment to a multiple of 128 lanes,
    #  * concatenate into one fused projection matrix (cast to the MXU compute dtype)
    #    + one fused f32 bias row (added to the f32 accumulator in-kernel).
    def pad_w(w, p):
        wt = w.astype(jnp.float32).T                      # (D_in, d_out)
        return jnp.pad(wt, ((0, 0), (0, p - wt.shape[1])))

    def pad_b(b, p):
        return jnp.pad(b.astype(jnp.float32), (0, p - b.shape[0]))

    w_qkv = jnp.concatenate([pad_w(wq, pq), pad_w(wk, pk), pad_w(wv, pv)],
                            axis=1).astype(cdt)                       # (D_in, d_qkv_pad)
    b_qkv = jnp.concatenate([pad_b(bq, pq), pad_b(bk, pk), pad_b(bv, pv)]
                            ).reshape(1, d_qkv_pad)                   # (1, d_qkv_pad) f32

    vmem_limit = _vmem_limit_bytes()
    if block_b is None:
        block_b = _pick_block_b(B, S, D_in, d_qkv_pad, pv,
                                jnp.dtype(cdt).itemsize, vmem_limit)
    assert B % block_b == 0, (B, block_b)

    kernel = functools.partial(_self_attention_kernel,
                               pq=pq, pk=pk, pv=pv, dim_q=dim_q)

    out_padded = pl.pallas_call(
        kernel,
        out_shape=jax.ShapeDtypeStruct((B, S, pv), x.dtype),
        grid_spec=pltpu.PrefetchScalarGridSpec(
            num_scalar_prefetch=0,
            grid=(B // block_b,),
            in_specs=[
                pl.BlockSpec((block_b, S, D_in), lambda b: (b, 0, 0)),   # x block
                pl.BlockSpec((D_in, d_qkv_pad), lambda b: (0, 0)),       # fused W (resident)
                pl.BlockSpec((1, d_qkv_pad), lambda b: (0, 0)),          # fused bias
            ],
            out_specs=pl.BlockSpec((block_b, S, pv), lambda b: (b, 0, 0)),
        ),
        compiler_params=pltpu.CompilerParams(
            dimension_semantics=("parallel",),
            vmem_limit_bytes=vmem_limit,
        ),
    )(x, w_qkv, b_qkv)

    # Strip the zero lane padding added to the V projection.
    return out_padded[..., :dim_v]


def self_attention_reference(x, wq, bq, wk, bk, wv, bv, dim_q):
    """Pure-JAX reference mirroring the PyTorch module exactly."""
    Q = jnp.einsum("bsd,qd->bsq", x, wq) + bq
    K = jnp.einsum("bsd,kd->bsk", x, wk) + bk
    V = jnp.einsum("bsd,vd->bsv", x, wv) + bv
    scores = jnp.einsum("bsq,btq->bst", Q, K)
    attn = jax.nn.softmax(scores, axis=-1)
    attn = attn / math.sqrt(dim_q)
    return jnp.einsum("bst,btv->bsv", attn, V)


if __name__ == "__main__":
    # Small deterministic setup: batch=2, seq=8, dim_input=32, dim_q=dim_k=16, dim_v=16
    B, S, D_IN = 2, 8, 32
    DIM_Q = DIM_K = 16
    DIM_V = 16

    key = jax.random.PRNGKey(0)
    kx, kwq, kbq, kwk, kbk, kwv, kbv = jax.random.split(key, 7)

    x = jax.random.normal(kx, (B, S, D_IN), dtype=jnp.float32)

    # Deterministic parameter init (uniform(-1/sqrt(fan_in), 1/sqrt(fan_in)), like nn.Linear)
    bound = 1.0 / math.sqrt(D_IN)
    wq = jax.random.uniform(kwq, (DIM_Q, D_IN), minval=-bound, maxval=bound, dtype=jnp.float32)
    bq = jax.random.uniform(kbq, (DIM_Q,), minval=-bound, maxval=bound, dtype=jnp.float32)
    wk = jax.random.uniform(kwk, (DIM_K, D_IN), minval=-bound, maxval=bound, dtype=jnp.float32)
    bk = jax.random.uniform(kbk, (DIM_K,), minval=-bound, maxval=bound, dtype=jnp.float32)
    wv = jax.random.uniform(kwv, (DIM_V, D_IN), minval=-bound, maxval=bound, dtype=jnp.float32)
    bv = jax.random.uniform(kbv, (DIM_V,), minval=-bound, maxval=bound, dtype=jnp.float32)

    out = self_attention(x, wq, bq, wk, bk, wv, bv)
    out = jax.block_until_ready(out)

    ref = self_attention_reference(x, wq, bq, wk, bk, wv, bv, DIM_Q)
    assert out.shape == (B, S, DIM_V), out.shape
    # approx=True reciprocal (EUP vrcp) adds ~1e-4 relative error vs the f32 reference.
    assert jnp.allclose(out, ref, atol=1e-2, rtol=1e-2), float(jnp.max(jnp.abs(out - ref)))

    print("KERNEL_OK")
</pallas_src>

<mosaic_0001>
module attributes {stable_mosaic.version = 11 : i64} {
  func.func @_self_attention_kernel(%arg0: i32, %arg1: memref<1x8x32xf32, #tpu.memory_space<vmem>>, %arg2: memref<32x384xf32, #tpu.memory_space<vmem>>, %arg3: memref<1x384xf32, #tpu.memory_space<vmem>>, %arg4: memref<1x8x128xf32, #tpu.memory_space<vmem>>) attributes {dimension_semantics = [#tpu.dimension_semantics<parallel>], iteration_bounds = array<i64: 2>, scalar_prefetch = 0 : i64, scratch_operands = 0 : i64, tpu.core_type = #tpu.core_type<tc>, window_params = [{transform_indices = @transform_0, window_bounds = array<i64: 1, 8, 32>}, {pipeline_mode = #tpu.pipeline_mode<synchronous>, transform_indices = @transform_1, window_bounds = array<i64: 32, 384>}, {pipeline_mode = #tpu.pipeline_mode<synchronous>, transform_indices = @transform_2, window_bounds = array<i64: 1, 384>}, {transform_indices = @transform_3, window_bounds = array<i64: 1, 8, 128>}]} {
    %c0 = arith.constant 0 : index
    %c0_0 = arith.constant 0 : index
    %c0_1 = arith.constant 0 : index
    %0 = vector.load %arg1[%c0, %c0_0, %c0_1] : memref<1x8x32xf32, #tpu.memory_space<vmem>>, vector<1x8x32xf32>
    %1 = vector.shape_cast %0 : vector<1x8x32xf32> to vector<8x32xf32>
    %c0_2 = arith.constant 0 : index
    %c0_3 = arith.constant 0 : index
    %2 = vector.load %arg2[%c0_2, %c0_3] : memref<32x384xf32, #tpu.memory_space<vmem>>, vector<32x384xf32>
    %cst = arith.constant dense<0.000000e+00> : vector<8x384xf32>
    %3 = tpu.matmul %1, %2, %cst {dimension_numbers = #tpu.dot_dimension_numbers<[1], [0], [0], [1], [0, 0, 1, 1], [], []>} : vector<8x32xf32>, vector<32x384xf32>, vector<8x384xf32> -> vector<8x384xf32>
    %c0_4 = arith.constant 0 : index
    %c0_5 = arith.constant 0 : index
    %4 = vector.load %arg3[%c0_4, %c0_5] : memref<1x384xf32, #tpu.memory_space<vmem>>, vector<1x384xf32>
    %5 = vector.broadcast %4 : vector<1x384xf32> to vector<8x384xf32>
    %6 = arith.addf %3, %5 : vector<8x384xf32>
    %7 = vector.extract_strided_slice %6 {offsets = [0, 0], sizes = [8, 128], strides = [1, 1]} : vector<8x384xf32> to vector<8x128xf32>
    %8 = vector.shape_cast %7 : vector<8x128xf32> to vector<1x8x128xf32>
    %9 = vector.extract_strided_slice %6 {offsets = [0, 128], sizes = [8, 128], strides = [1, 1]} : vector<8x384xf32> to vector<8x128xf32>
    %10 = vector.shape_cast %9 : vector<8x128xf32> to vector<1x8x128xf32>
    %11 = vector.extract_strided_slice %6 {offsets = [0, 256], sizes = [8, 128], strides = [1, 1]} : vector<8x384xf32> to vector<8x128xf32>
    %12 = vector.shape_cast %11 : vector<8x128xf32> to vector<1x8x128xf32>
    "tpu.trace_start"() <{level = 10 : i32, message = "bqd,bkd->bqk"}> : () -> ()
    %cst_6 = arith.constant dense<0.000000e+00> : vector<1x8x8xf32>
    %13 = tpu.matmul %8, %10, %cst_6 {dimension_numbers = #tpu.dot_dimension_numbers<[2], [2], [1], [1], [0, 0, 0, 1, 1, 1], [0], [0]>} : vector<1x8x128xf32>, vector<1x8x128xf32>, vector<1x8x8xf32> -> vector<1x8x8xf32>
    "tpu.trace_stop"() : () -> ()
    %cst_7 = arith.constant dense<0xFF800000> : vector<1x8xf32>
    %14 = vector.multi_reduction <maximumf>, %13, %cst_7 [2] : vector<1x8x8xf32> to vector<1x8xf32>
    %15 = vector.shape_cast %14 : vector<1x8xf32> to vector<1x8x1xf32>
    %16 = vector.broadcast %15 : vector<1x8x1xf32> to vector<1x8x8xf32>
    %17 = arith.subf %13, %16 : vector<1x8x8xf32>
    %18 = math.exp %17 : vector<1x8x8xf32>
    %cst_8 = arith.constant dense<0.000000e+00> : vector<1x8xf32>
    %19 = vector.multi_reduction <add>, %18, %cst_8 [2] : vector<1x8x8xf32> to vector<1x8xf32>
    %20 = vector.shape_cast %19 : vector<1x8xf32> to vector<1x8x1xf32>
    %21 = tpu.reciprocal %20 {approx = true} : vector<1x8x1xf32> -> vector<1x8x1xf32>
    %cst_9 = arith.constant 2.500000e-01 : f32
    %22 = vector.broadcast %cst_9 : f32 to vector<1x8x1xf32>
    %23 = arith.mulf %21, %22 : vector<1x8x1xf32>
    %24 = vector.broadcast %23 : vector<1x8x1xf32> to vector<1x8x8xf32>
    %25 = arith.mulf %18, %24 : vector<1x8x8xf32>
    "tpu.trace_start"() <{level = 10 : i32, message = "bqk,bkd->bqd"}> : () -> ()
    %cst_10 = arith.constant dense<0.000000e+00> : vector<1x8x128xf32>
    %26 = tpu.matmul %25, %12, %cst_10 {dimension_numbers = #tpu.dot_dimension_numbers<[2], [1], [1], [2], [0, 0, 0, 1, 1, 2], [0], [0]>} : vector<1x8x8xf32>, vector<1x8x128xf32>, vector<1x8x128xf32> -> vector<1x8x128xf32>
    "tpu.trace_stop"() : () -> ()
    %c0_11 = arith.constant 0 : index
    %c0_12 = arith.constant 0 : index
    %c0_13 = arith.constant 0 : index
    %27 = vector.load %arg4[%c0_11, %c0_12, %c0_13] : memref<1x8x128xf32, #tpu.memory_space<vmem>>, vector<1x8x128xf32>
    tpu.vector_store %arg4[%c0_11, %c0_12, %c0_13], %26 {strides = array<i32>} : memref<1x8x128xf32, #tpu.memory_space<vmem>>, vector<1x8x128xf32>,
    return
  }
  func.func @transform_0(%arg0: i32) -> (i32, i32, i32) {
    %c0_i32 = arith.constant 0 : i32
    %c0_i32_0 = arith.constant 0 : i32
    %c0_i32_1 = arith.constant 0 : i32
    return %arg0, %c0_i32, %c0_i32_0 : i32, i32, i32
  }
  func.func @transform_1(%arg0: i32) -> (i32, i32) {
    %c0_i32 = arith.constant 0 : i32
    %c0_i32_0 = arith.constant 0 : i32
    %c0_i32_1 = arith.constant 0 : i32
    return %c0_i32, %c0_i32_0 : i32, i32
  }
  func.func @transform_2(%arg0: i32) -> (i32, i32) {
    %c0_i32 = arith.constant 0 : i32
    %c0_i32_0 = arith.constant 0 : i32
    %c0_i32_1 = arith.constant 0 : i32
    return %c0_i32, %c0_i32_0 : i32, i32
  }
  func.func @transform_3(%arg0: i32) -> (i32, i32, i32) {
    %c0_i32 = arith.constant 0 : i32
    %c0_i32_0 = arith.constant 0 : i32
    %c0_i32_1 = arith.constant 0 : i32
    return %arg0, %c0_i32, %c0_i32_0 : i32, i32, i32
  }
}

</mosaic_0001>

<bundles_post_ra>
// kernel: tpu_custom_call.1
= control target key start
LH: loop header
LB: loop body
LE: loop exit
PB: predicated region body
PF: predicated region fallthrough
CT: control target
= control target key end

     0   :  { %8 = vsyncpa [#allocation3], 0  ;;  %s1071_s0 = inlined_call_operand.hbm [shape: f32[2,8,32], index: 0, kind: input, shape index: {}]   ;;  %s1072_s1 = inlined_call_operand.hbm [shape: f32[32,384], index: 1, kind: input, shape index: {}]   ;;  %s1073_s2 = inlined_call_operand.vmem [shape: f32[1,384], index: 2, kind: input, shape index: {}]   ;;  %s1074_s3 = inlined_call_operand.hbm [shape: f32[2,8,128], index: 3, kind: output, shape index: {}]  }
   0x1   :  { %10 = vsyncpa [#allocation3 + $0x1], 0 }
   0x2   :  { %11 = vsyncpa [#allocation6], 0 }
   0x3   :  { %12 = vsyncpa [#allocation4], 0 }
   0x4   :  { %14 = vsyncpa [#allocation4 + $0x1], 0  ;;  %s890_s12 = smov 0   ;;  %s892_s13 = smov 0  }
   0x5   :  { %s894_s14 = smov 0   ;;  %s896_s15 = smov 0  }
   0x6 LB: > { %s911_s16 = sadd.s32 4294967295, %s861_s15   ;;  %s627_s17 = sadd.s32 4294967294, %s861_s15   ;;  %s861_s15 = sphi %s896_s15, %s1096_s15   ;;  %s857_s14 = sphi %s894_s14, %s1095_s14   ;;  %s853_s13 = sphi %s892_s13, %s1094_s13   ;;  %s849_s12 = sphi %s890_s12, %s1093_s12  }
   0x7   : > { %p40_p0 = scmp.ne.s32.totalorder %s853_s13, %s849_s12  ;;  %p1075_p1 = scmp.eq.s32.totalorder %s911_s16, 0 }
   0x8   : > { %p112_p3 = scmp.eq.s32.totalorder %s627_s17, 1  ;;  %p628_p5 = scmp.ge.s32.totalorder %s861_s15, 1 }
   0x9   : > { %p920_p4 = por %p1075_p1, %p40_p0  ;;  %p119_p7 = scmp.lt.s32.totalorder %s861_s15, 3 }
   0xa   : > { %p925_p6 = por %p112_p3, %p40_p0  ;;  %s863_s21 = smov [#allocation5]  }
   0xb   : > { %s1079_s18 = scalar_select %p920_p4, 1, 0 }
   0xc   : > { %s1080_s19 = scalar_select %p925_p6, 1, 0 }
   0xd   : > { %p930_p8 = pnand %p628_p5, %p119_p7  ;;  %s131_s22 = sshll.u32 %s863_s21, 4  ;;  %s132_s22 = int_to_ptr.vmem [resolvable:$true] %s131_s22 }
   0xe   : > { %s944_s24 = sadd.s32 1, %s861_s15   ;;  %s27_s25 = sadd.s32 1, %s857_s14 }
   0xf   : > { %s1081_s20 = scalar_select %p930_p8, 1, 0 }
  0x10   : > { %p682_p9 = pneg %p930_p8  ;;  %s24_s26 = ssub.s32 %s861_s15, %s944_s24 }
  0x11   : > { %s750_s27 = scalar_lea.vmem %s132_s22, 1536  ;;  %p758_p5 = scmp.lt.s32.totalorder %s132_s22, %s132_s22 }
  0x12   : > { %p939_p11 = pnand %p682_p9, %p1075_p1  ;;  %p751_p13 = scmp.ne.s32.totalorder %s132_s22, %s750_s27 }
  0x13   : > { %p759_p7 = scmp.lt.s32.totalorder %s750_s27, %s750_s27 }
  0x14   : > { %p741_p12 = pneg %p939_p11 }
  0x15   : > { %p760_p10 = por %p759_p7, %p758_p5 }
  0x16   : > { %p753_p0 = pnand %p751_p13, %p741_p12 }
  0x18   : > { %p754_p3 = pneg %p753_p0 }
  0x1a   : > { %p761_p2 = pnand %p760_p10, %p754_p3 }
  0x1c   : > { %764 = shalt.err (!%p761_p2)
}
  0x1d   : > { %s864_s28 = smov 384   ;;  %s865_s29 = smov 24  }
  0x1e   : > { %685 = dma.hbm_to_vmem [thread:$0]  (!%p939_p11), %s1072_s1, 1536, %s132_s22, [#allocation6], %s864_s28, %s864_s28, %s865_s29  }
  0x1f   : > { %p25_p9 = scmp.eq.s32.totalorder %s24_s26, 0  ;;  %p34_p12 = scmp.ne.s32.totalorder %s857_s14, %s853_s13 }
  0x20   : > { %p35_p10 = scmp.eq.s32.totalorder %s861_s15, 0  ;;  %p695_p2 = scmp.lt.s32.totalorder %s861_s15, 2 }
  0x21   : > { %s961_s5 = scalar_select %p25_p9, %s857_s14, %s27_s25  }
  0x22   : > { %p36_p13 = por %p35_p10, %p34_p12  ;;  %p1083_p0 = scmp.eq.s32.totalorder %s911_s16, 1 }
  0x23   : > { %s148_s7 = sand.u32 1, %s857_s14   ;;  %s632_s8 = sshll.u32 %s861_s15, 7 }
  0x24   : > { %p965_p3 = por %p1083_p0, %p34_p12  ;;  %s631_s9 = sshll.u32 %s148_s7, 3 }
  0x25   : > { %s974_s17 = scalar_lea.hbm %s1071_s0, %s632_s8  ;;  %s152_s21 = scalar_lea.vmem [#allocation2], %s631_s9 }
  0x26   : > { %s1084_s6 = scalar_select %p965_p3, 1, 0 }
  0x27   : > { %s159_s22 = sshll.u32 %s152_s21, 4  ;;  %p976_p11 = pnand %p695_p2, %p36_p13  ;;  %s160_s22 = int_to_ptr.vmem [resolvable:$true] %s159_s22 }
  0x28   : > { %s149_s25 = scalar_lea.sflag [#allocation3], %s148_s7  ;;  %s765_s26 = scalar_lea.hbm %s974_s17, 128 }
  0x29   : > { %p766_p5 = scmp.ne.s32.totalorder %s974_s17, %s765_s26  ;;  %p767_p7 = pneg %p976_p11 }
  0x2a   : > { %s770_s29 = scalar_lea.hbm %s1071_s0, 256  ;;  %p771_p10 = scmp.lt.s32.totalorder %s974_s17, %s1071_s0 }
  0x2b   : > { %p768_p9 = pnand %p767_p7, %p766_p5  ;;  %p772_p2 = scmp.lt.s32.totalorder %s770_s29, %s765_s26 }
  0x2d   : > { %p769_p12 = pneg %p768_p9  ;;  %p773_p13 = por %p772_p2, %p771_p10 }
  0x2f   : > { %p774_p0 = pnand %p773_p13, %p769_p12 }
  0x31   : > { %777 = shalt.err (!%p774_p0)
}
  0x32   : > { %s778_s8 = scalar_lea.vmem %s160_s22, 128  ;;  %s866_s7 = smov [#allocation2]  }
  0x33   : > { %p779_p1 = scmp.ne.s32.totalorder %s160_s22, %s778_s8  ;;  %s783_s9 = sshll.u32 %s866_s7, 4  ;;  %s784_s9 = int_to_ptr.vmem [resolvable:$false] %s783_s9 }
  0x34   : > { %s785_s10 = scalar_lea.vmem %s784_s9, 256  ;;  %p786_p5 = scmp.lt.s32.totalorder %s160_s22, %s784_s9 }
  0x35   : > { %p781_p6 = pnand %p779_p1, %p767_p7  ;;  %p787_p9 = scmp.lt.s32.totalorder %s785_s10, %s778_s8 }
  0x37   : > { %p782_p3 = pneg %p781_p6  ;;  %p788_p4 = por %p787_p9, %p786_p5 }
  0x39   : > { %p789_p8 = pnand %p788_p4, %p782_p3 }
  0x3b   : > { %792 = shalt.err (!%p789_p8)
}
  0x3c   : > { %689 = dma.hbm_to_vmem [thread:$0]  (!%p976_p11), %s974_s17, 128, %s160_s22, %s149_s25  }
  0x3d   : > { %p1086_p12 = scmp.ne.s32.totalorder %s1081_s20, 0 }
  0x3e   : > { %s997_s11 = sand.u32 (!%p1086_p12), 1, %s853_s13   ;;  %p1087_p1 = scmp.ne.s32.totalorder (!%p1086_p12), %s1079_s18, 0 }
  0x3f   : > { %168 = sbr.rel (%p1086_p12) target bundleno = 996 (0x3e4), region = 32  ;;  %s634_s21 = sshll.u32 (!%p1086_p12), %s997_s11, 3 }
  0x40   : > { %s171_s26 = scalar_lea.sflag (!%p1086_p12), [#allocation3], %s997_s11  ;;  %s174_s27 = scalar_lea.vmem (!%p1086_p12), [#allocation2], %s634_s21 }
  0x44   : > { %836 = dma.done.wait (%p1087_p1), %s171_s26, 128  }
  0x45   : > { %838 = vsyncadd (%p1087_p1), %s171_s26, 4294967168  ;;  %p1088_p4 = scmp.eq.s32.totalorder %s911_s16, 0 }
  0x47   : > { %840 = dma.done.wait (%p1088_p4), [#allocation6], 1536   ;;  %p1089_p6 = pmov %p1088_p4 }
  0x48   : > { %v867_v0 = vmov 0.0   ;;  %v212_v1 = vld [vmem:[#allocation5 + $0x50] sm:$0xff]  ;;  %v211_v2 = vld [vmem:[#allocation5 + $0x48] sm:$0xff]  ;;  %v209_v3 = vld [vmem:[#allocation5 + $0x38] sm:$0xff]  ;;  %vm231_vm0 = vcmask 261120   ;;  %vm868_vm1 = vmmov 0   ;;  %v216_v10 = vlaneseq }
  0x49   : > { %842 = vsyncadd (%p1089_p6), [#allocation6], 4294965760  ;;  %299 = vmatprep.mubr.f32.mxu0 %v867_v0  ;;  %653 = vmatprep.subr.mxu1 %v867_v0  ;;  %v208_v4 = vld [vmem:[#allocation5 + $0x30] sm:$0xff]  ;;  %v206_v5 = vld [vmem:[#allocation5 + $0x20] sm:$0xff]  ;;  %vm446_vm2 = vcmask 64512   ;;  %s200_s17 = scalar_lea.vmem [#allocation7], %s634_s21 }
  0x4a   : > { %259 = vmatprep.subr.mxu0 %v212_v1  ;;  %v205_v6 = vld [vmem:[#allocation5 + $0x18] sm:$0xff]  ;;  %v203_v7 = vld [vmem:[#allocation5 + $0x8] sm:$0xff]  ;;  %v202_v8 = vld [vmem:[#allocation5] sm:$0xff]  ;;  %661 = vmatprep.mubr.msk.f32.mxu1 %vm868_vm1, %v867_v0  ;;  %v217_v11 = vshrl.u32 %v216_v10, 7  ;;  %s547_s22 = sshll.u32 %s200_s17, 4  ;;  %s641_s23 = sshll.u32 %s911_s16, 7  ;;  %s1025_s22 = int_to_ptr.vmem [resolvable:$true] %s547_s22 }
  0x4b   : > { %260 = vmatpush1.msra.mxu0 %v211_v2  ;;  %v201_v9 = vld [vmem:[%s174_s27] sm:$0xff]  ;;  %v210_v22 = vld [vmem:[#allocation5 + $0x40] sm:$0xff]  ;;  %v207_v23 = vld [vmem:[#allocation5 + $0x28] sm:$0xff]  ;;  %s1030_s29 = scalar_lea.hbm %s1074_s3, %s641_s23  ;;  %s534_s30 = scalar_lea.sflag [#allocation4], %s997_s11 }
  0x4c   : > { %261 = vmatprep.subr.mxu0 %v209_v3  ;;  %v222_v12 = vsub.s32 1, %v217_v11  ;;  %v214_v13 = vld [vmem:[%s1073_s2] sm:$0x7]  ;;  %v218_v14 = vsub.s32 0, %v217_v11  ;;  %v213_v21 = vld [vmem:[#allocation5 + $0x58] sm:$0xff]  ;;  %v226_v33 = vsub.s32 2, %v217_v11 }
  0x4d   : > { %262 = vmatpush1.msra.mxu0 %v208_v4  ;;  %654 = vmatpush3.msra.mxu1 %v213_v21  ;;  %v204_v24 = vld [vmem:[#allocation5 + $0x10] sm:$0xff]  ;;  %s793_s4 = scalar_lea.vmem %s1025_s22, 128  ;;  %p1090_p3 = scmp.ne.s32.totalorder %s1084_s6, 0 }
  0x4e   : > { %263 = vmatprep.subr.mxu0 %v206_v5  ;;  %v223_v15 = vrot.slane %v214_v13, %v222_v12  ;;  %v219_v17 = vrot.slane %v214_v13, %v218_v14  ;;  %655 = vmatprep.subr.mxu1 %v867_v0  ;;  %v227_v35 = vrot.slane %v214_v13, %v226_v33  ;;  %p794_p8 = scmp.ne.s32.totalorder %s1025_s22, %s793_s4  ;;  %s869_s16 = smov [#allocation7]  }
  0x4f   : > { %264 = vmatpush1.msra.mxu0 %v205_v6  ;;  %656 = vmatpush3.msra.mxu1 %v210_v22  ;;  %s797_s8 = sshll.u32 %s869_s16, 4  ;;  %s798_s8 = int_to_ptr.vmem [resolvable:$false] %s797_s8 }
  0x50   : > { %265 = vmatprep.subr.mxu0 %v203_v7  ;;  %657 = vmatprep.subr.mxu1 %v867_v0  ;;  %p795_p11 = pnand %p794_p8, %p1090_p3  ;;  %s799_s7 = scalar_lea.vmem %s798_s8, 256 }
  0x51   : > { %266 = vmatpush1.msra.mxu0 %v202_v8  ;;  %658 = vmatpush3.msra.mxu1 %v207_v23  ;;  %p800_p10 = scmp.lt.s32.totalorder %s1025_s22, %s798_s8  ;;  %p801_p2 = scmp.lt.s32.totalorder %s799_s7, %s793_s4 }
  0x52   : > { %637 = vmatmul.mubr.msk.f32.vlgmr.msra.gmra.mxu0 %vm231_vm0, %v201_v9  ;;  %664 = vmatprep.subr.mxu0 %v867_v0  ;;  %p796_p7 = pneg %p795_p11 }
  0x53   : > { %666 = vmatprep.mubr.msk.f32.mxu0 %vm868_vm1, %v867_v0  ;;  %659 = vmatprep.subr.mxu1 %v867_v0  ;;  %p802_p13 = por %p801_p2, %p800_p10 }
  0x54   : > { %660 = vmatpush3.msra.mxu1 %v204_v24 }
  0x55   : > { %662 = vmatmul.mubr.msk.f32.vlgmr.msra.gmra.mxu1 %vm231_vm0, %v201_v9  ;;  %669 = vmatprep.subr.mxu1 %v867_v0  ;;  %p803_p0 = pnand %p802_p13, %p796_p7 }
  0x56   : > { %671 = vmatprep.mubr.msk.f32.mxu1 %vm868_vm1, %v867_v0 }
 0x112   : > { %v301_v16 = vpop.f32.mrf.mxu0 }
 0x113   : > { %v302_v20 = vadd.f32 %v301_v16, %v219_v17 }
 0x114   : > { %v303_v18 = vpop.f32.mrf.mxu0 }
 0x115   : > { %v304_v19 = vadd.f32 %v303_v18, %v223_v15  ;;  %v372_v34 = vpop.f32.mrf.mxu1 }
 0x116   : > { %v373_v37 = vadd.f32 %v372_v34, %v227_v35 }
 0x117   : > { %665 = vmatpush3.xpose.msra.mxu0 %v304_v19  ;;  %v663_v36 = vpop.f32.mrf.mxu1 }
 0x118   : > { %670 = vmatpush3.msra.mxu1 %v373_v37 }
 0x11a   : > { %667 = vmatmul.mubr.f32.vlgmr.msra.gmra.mxu0 %v302_v20 }
 0x1da   : > { %v442_v25 = vpop.f32.mrf.mxu0 }
 0x1db   : > { %v447_v26 = vsel %vm446_vm2, %v442_v25, -inf }
 0x1dc   : > { %448 = vmax.xlane.f32.xlu0 %v447_v26  ;;  %v668_v27 = vpop.f32.mrf.mxu0 }
 0x265   : > { %v449_v28 = vpop.xlane.xlu0 %448 }
 0x266   : > { %v450_v29 = vsub.f32 %v442_v25, %v449_v28 }
 0x268   : > { %v451_v30 = vmul.f32 1.442695, %v450_v29 }
 0x26a   : > { %735 = vpow2.f32 %v451_v30 }
 0x277   : > { %v736_v31 = vpop.eup %735 }
 0x278   : > { %v453_v32 = vsel %vm446_vm2, %v736_v31, 0.0 }
 0x279   : > { %454 = vadd.xlane.f32.xlu0 %v453_v32 }
 0x302   : > { %v455_v38 = vpop.xlane.xlu0 %454 }
 0x303   : > { %737 = vrcp.f32 %v455_v38 }
 0x310   : > { %v738_v39 = vpop.eup %737 }
 0x311   : > { %v457_v40 = vmul.f32 0.25, %v738_v39 }
 0x313   : > { %v458_v41 = vmul.f32 %v736_v31, %v457_v40 }
 0x315   : > { %672 = vmatmul.mubr.msk.f32.vlgmr.msra.gmra.mxu1 %vm446_vm2, %v458_v41 }
 0x3d5   : > { %v528_v42 = vpop.f32.mrf.mxu1 }
 0x3d6   : > { %532 = vst [vmem:[%s200_s17] sm:$0xff] %v528_v42 }
 0x3d7   : > { %v673_v43 = vpop.f32.mrf.mxu1 }
 0x3d8   : > { %806 = shalt.err (!%p803_p0)
}
 0x3d9   : > { %s807_s9 = scalar_lea.hbm %s1030_s29, 128  ;;  %s811_s21 = scalar_lea.hbm %s1074_s3, 256 }
 0x3da   : > { %p808_p5 = scmp.ne.s32.totalorder %s1030_s29, %s807_s9  ;;  %p812_p1 = scmp.lt.s32.totalorder %s1030_s29, %s1074_s3 }
 0x3db   : > { %p813_p4 = scmp.lt.s32.totalorder %s811_s21, %s807_s9 }
 0x3dc   : > { %p809_p9 = pnand %p808_p5, %p1090_p3 }
 0x3dd   : > { %p814_p6 = por %p813_p4, %p812_p1 }
 0x3de   : > { %p810_p12 = pneg %p809_p9 }
 0x3e0   : > { %p815_p8 = pnand %p814_p6, %p810_p12 }
 0x3e2   : > { %818 = shalt.err (!%p815_p8)
}
 0x3e3   : > { %680 = dma.vmem_to_hbm [thread:$0]  (%p1090_p3), %s1025_s22, 128, %s1030_s29, %s534_s30  }
 0x3e4 PF: > { %s559_s18 = sand.u32 1, %s849_s12   ;;  %p1091_p11 = scmp.ne.s32.totalorder %s1080_s19, 0 }
 0x3e5   : > { %p1092_p7 = scmp.ge.s32.totalorder %s861_s15, 2  ;;  %s560_s20 = scalar_lea.sflag [#allocation4], %s559_s18 }
 0x3e7   : > { %p691_p10 = pnand %p1092_p7, %p1091_p11 }
 0x3e9   : > { %p692_p2 = pneg %p691_p10 }
 0x3eb   : > { %844 = dma.done.wait (%p692_p2), %s560_s20, 128  }
 0x3ec   : > { %846 = vsyncadd (%p692_p2), %s560_s20, 4294967168  ;;  %p17_p13 = scmp.ge.s32.totalorder %s944_s24, 4   ;;  %s1093_s12 = smov %s853_s13 }
 0x3ed   : > { %s1094_s13 = smov %s857_s14  ;;  %s1095_s14 = smov %s961_s5 }
 0x3ee   : > { %s1096_s15 = smov %s944_s24  ;;  %19 = sbr.rel (!%p17_p13) target bundleno = 6 (0x6), region = 81 }
 0x3f3   :  { %565 = vsyncpa [#allocation3], 1 }
 0x3f4   :  { %567 = vsyncpa [#allocation3 + $0x1], 1 }
 0x3f5   :  { %568 = vsyncpa [#allocation6], 1 }
 0x3f6   :  { %569 = vsyncpa [#allocation4], 1 }
 0x3f7   :  { %571 = vsyncpa [#allocation4 + $0x1], 1 }

</bundles_post_ra>
